<compile_context>
chip_gen: v7x
topology: tpu7x:2x2x1
jax: 0.10.0
libtpu: 0.0.40
codegen_flags: <defaults>
</compile_context>

<pallas_src>
import functools

import jax
import jax.numpy as jnp
import numpy as np
from jax import lax
from jax.experimental import pallas as pl
from jax.experimental.pallas import tpu as pltpu


def _batch_std_f32(x_f32):
    """Unbiased (ddof=1) std over the batch (leading) dim of a (B, TC, HW) f32 block."""
    B = x_f32.shape[0]
    mean = jnp.mean(x_f32, axis=0)                      # (TC, HW)
    d = x_f32 - mean
    # NOTE: B == 1 divides by zero -> inf/nan, identical to torch's unbiased std.
    var = jnp.sum(d * d, axis=0) * (1.0 / (B - 1))      # (TC, HW)
    return jnp.sqrt(var)


# ---------------------------------------------------------------------------
# Path A: tiny shapes (C < 8) — whole problem in one VMEM block, no grid.
# ---------------------------------------------------------------------------
def _mbstd_small_kernel(x_ref, o_ref):
    # x_ref: (B, C, HW), o_ref: (B, C+1, HW)
    B, C, HW = x_ref.shape
    x = x_ref[...]                                       # original dtype
    std = _batch_std_f32(x.astype(jnp.float32))          # (C, HW)
    s = jnp.mean(std)                                    # scalar minibatch stddev
    o_ref[:, :C, :] = x                                  # passthrough, original dtype
    o_ref[:, C:, :] = jnp.broadcast_to(s, (B, 1, HW)).astype(o_ref.dtype)


# ---------------------------------------------------------------------------
# Path B: channel-tiled grid with a carried scalar accumulator.
# ---------------------------------------------------------------------------
def _mbstd_tiled_kernel(x_ref, o_ref, acc_ref, *, C):
    # Block j owns output channels [j*TC, (j+1)*TC) (the output DMA clips at C+1).
    # acc_ref is a (1,1) f32 VMEM scratch carried across the sequential grid axis.
    j = pl.program_id(0)
    n = pl.num_programs(0)
    B, TC, HW = x_ref.shape

    @pl.when(j == 0)
    def _init():
        acc_ref[...] = jnp.zeros_like(acc_ref)

    # Number of valid passthrough channels in this block: TC for every block except
    # the one containing channel C.  Channels read past C (partial edge block or the
    # clamped re-read on the finalize step) are masked out of the statistics.
    r = jnp.clip(C - j * TC, 0, TC)

    x = x_ref[...]                                       # (B, TC, HW), original dtype
    xf = x.astype(jnp.float32)
    std = _batch_std_f32(xf)                             # (TC, HW)
    ch = lax.broadcasted_iota(jnp.int32, (TC, HW), 0)
    acc_ref[...] += jnp.sum(jnp.where(ch < r, std, 0.0), keepdims=True)

    @pl.when(j < n - 1)
    def _passthrough():
        o_ref[...] = x                                   # straight copy, original dtype

    @pl.when(j == n - 1)
    def _finalize():
        # All tiles (including this one) are accumulated: the minibatch-stddev scalar.
        s = acc_ref[...].reshape(1, 1, 1) * (1.0 / (C * HW))
        ch3 = lax.broadcasted_iota(jnp.int32, (B, TC, HW), 1)
        # local channels < r: passthrough; local channel r (== absolute channel C):
        # the std scalar; anything past C+1 is clipped by the output write-back DMA.
        o_ref[...] = jnp.where(ch3 < r, xf, s).astype(o_ref.dtype)


def _choose_channel_tile(B, C, HW, itemsize):
    """Multiple-of-8 channel tile keeping one (B, TC, HW) block around <= 1 MiB."""
    assert C >= 8
    cmax = (C // 8) * 8
    per_ch_bytes = B * HW * (itemsize + 4)   # block in its own dtype + f32 stats temps
    tc = 8
    while 2 * tc <= cmax and 2 * tc * per_ch_bytes <= (1 << 20):
        tc *= 2
    return tc


def minibatch_stddev_forward(x):
    """MinibatchStdDev.forward: x (B, C, H, W) NCHW -> (B, C+1, H, W) NCHW."""
    B, C, H, W = x.shape
    HW = H * W
    x3 = x.reshape(B, C, HW)                             # free row-major reshape
    out_shape = jax.ShapeDtypeStruct((B, C + 1, HW), x.dtype)

    if C < 8:
        # Tiny channel count (e.g. the toy test shape): one VMEM block, no grid.
        vmem = pl.BlockSpec(memory_space=pltpu.MemorySpace.VMEM)
        out3 = pl.pallas_call(
            _mbstd_small_kernel,
            out_shape=out_shape,
            in_specs=[vmem],
            out_specs=vmem,
        )(x3)
    else:
        TC = _choose_channel_tile(B, C, HW, x.dtype.itemsize)
        grid = (pl.cdiv(C + 1, TC),)
        # Last block index that contains any valid input channels; the finalize step
        # (when TC | C) clamps to it and simply re-reads one tile (its stats are
        # masked out), which is cheaper than any alternative output layout.
        last_in_block = pl.cdiv(C, TC) - 1
        out3 = pl.pallas_call(
            functools.partial(_mbstd_tiled_kernel, C=C),
            out_shape=out_shape,
            grid=grid,
            in_specs=[pl.BlockSpec(
                (B, TC, HW),
                lambda j: (0, jnp.minimum(j, last_in_block), 0))],
            out_specs=pl.BlockSpec((B, TC, HW), lambda j: (0, j, 0)),
            scratch_shapes=[pltpu.VMEM((1, 1), jnp.float32)],
            compiler_params=pltpu.CompilerParams(
                dimension_semantics=("arbitrary",),
                # 32 MiB is within every chip's physical VMEM (64 MiB on v7x) and
                # raises v5e's 16 MiB default for headroom; blocks are ~<=1 MiB so
                # this is never the limiter in practice.
                vmem_limit_bytes=32 * 1024 * 1024,
            ),
        )(x3)

    return out3.reshape(B, C + 1, H, W)


def reference_forward(x):
    """Pure-JAX reference matching the PyTorch module."""
    B, C, H, W = x.shape
    std = jnp.std(x.astype(jnp.float32), axis=0, ddof=1)   # unbiased, like torch
    s = jnp.mean(std)
    std_ch = jnp.full((B, 1, H, W), s, x.dtype)
    return jnp.concatenate([x, std_ch], axis=1)


if __name__ == "__main__":
    key = jax.random.PRNGKey(0)

    shapes = [
        (2, 4, 16, 16),   # required toy shape: tiny path (C < 8), lane-dense HW=256
        (4, 16, 8, 8),    # tiled path: grid=2, clamped finalize re-read, HW<128
        (2, 24, 4, 4),    # tiled path: partial last input tile (TC does not divide C)
    ]
    for (B, C, H, W) in shapes:
        key, sub = jax.random.split(key)
        x = jax.random.normal(sub, (B, C, H, W), jnp.float32)
        out = jax.block_until_ready(minibatch_stddev_forward(x))
        ref = jax.block_until_ready(reference_forward(x))
        assert out.shape == (B, C + 1, H, W), out.shape
        np.testing.assert_allclose(np.asarray(out), np.asarray(ref),
                                   rtol=1e-5, atol=1e-5)

    print("KERNEL_OK")
</pallas_src>

<mosaic_0001>
module attributes {stable_mosaic.version = 11 : i64} {
  func.func @_mbstd_small_kernel(%arg0: memref<2x4x256xf32, #tpu.memory_space<vmem>>, %arg1: memref<2x5x256xf32, #tpu.memory_space<vmem>>) attributes {dimension_semantics = [], scalar_prefetch = 0 : i64, scratch_operands = 0 : i64, tpu.core_type = #tpu.core_type<tc>} {
    %c0 = arith.constant 0 : index
    %c0_0 = arith.constant 0 : index
    %c0_1 = arith.constant 0 : index
    %0 = vector.load %arg0[%c0, %c0_0, %c0_1] : memref<2x4x256xf32, #tpu.memory_space<vmem>>, vector<2x4x256xf32>
    %cst = arith.constant dense<0.000000e+00> : vector<4x256xf32>
    %1 = vector.multi_reduction <add>, %0, %cst [0] : vector<2x4x256xf32> to vector<4x256xf32>
    %cst_2 = arith.constant 2.000000e+00 : f32
    %2 = vector.broadcast %cst_2 : f32 to vector<4x256xf32>
    %3 = arith.divf %1, %2 : vector<4x256xf32>
    %4 = vector.shape_cast %3 : vector<4x256xf32> to vector<1x4x256xf32>
    %5 = vector.broadcast %4 : vector<1x4x256xf32> to vector<2x4x256xf32>
    %6 = arith.subf %0, %5 : vector<2x4x256xf32>
    %7 = arith.mulf %6, %6 : vector<2x4x256xf32>
    %cst_3 = arith.constant dense<0.000000e+00> : vector<4x256xf32>
    %8 = vector.multi_reduction <add>, %7, %cst_3 [0] : vector<2x4x256xf32> to vector<4x256xf32>
    %cst_4 = arith.constant 1.000000e+00 : f32
    %9 = vector.broadcast %cst_4 : f32 to vector<4x256xf32>
    %10 = arith.mulf %8, %9 : vector<4x256xf32>
    %11 = math.sqrt %10 : vector<4x256xf32>
    %12 = vector.shape_cast %11 : vector<4x256xf32> to vector<1x4x256xf32>
    %cst_5 = arith.constant dense<0.000000e+00> : vector<1xf32>
    %13 = vector.multi_reduction <add>, %12, %cst_5 [1, 2] : vector<1x4x256xf32> to vector<1xf32>
    %14 = vector.shape_cast %13 : vector<1xf32> to vector<1x1x1xf32>
    %15 = vector.extract %14[0, 0, 0] : f32 from vector<1x1x1xf32>
    %cst_6 = arith.constant 1.024000e+03 : f32
    %16 = arith.divf %15, %cst_6 : f32
    %c0_7 = arith.constant 0 : index
    %c0_8 = arith.constant 0 : index
    %c0_9 = arith.constant 0 : index
    %17 = vector.load %arg1[%c0_7, %c0_8, %c0_9] : memref<2x5x256xf32, #tpu.memory_space<vmem>>, vector<2x4x256xf32>
    tpu.vector_store %arg1[%c0_7, %c0_8, %c0_9], %0 {strides = array<i32>} : memref<2x5x256xf32, #tpu.memory_space<vmem>>, vector<2x4x256xf32>,
    %18 = vector.broadcast %16 : f32 to vector<2x1x256xf32>
    %c0_10 = arith.constant 0 : index
    %c4 = arith.constant 4 : index
    %c0_11 = arith.constant 0 : index
    %19 = vector.load %arg1[%c0_10, %c4, %c0_11] : memref<2x5x256xf32, #tpu.memory_space<vmem>>, vector<2x1x256xf32>
    tpu.vector_store %arg1[%c0_10, %c4, %c0_11], %18 {strides = array<i32>} : memref<2x5x256xf32, #tpu.memory_space<vmem>>, vector<2x1x256xf32>,
    return
  }
}

</mosaic_0001>

<bundles_post_ra>
// kernel: tpu_custom_call.1
= control target key start
LH: loop header
LB: loop body
LE: loop exit
PB: predicated region body
PF: predicated region fallthrough
CT: control target
= control target key end

     0   :  { %6 = vsyncpa [#allocation3], 0  ;;  %s146_s6 = smov [#allocation2]   ;;  %s199_s0 = inlined_call_operand.hbm [shape: f32[2,4,256], index: 0, kind: input, shape index: {}]   ;;  %s200_s1 = inlined_call_operand.vmem [shape: f32[2,5,256], index: 1, kind: output, shape index: {}]  }
   0x1   :  { %s12_s7 = sshll.u32 %s146_s6, 4  ;;  %s122_s10 = scalar_lea.hbm %s199_s0, 256  ;;  %s13_s7 = int_to_ptr.vmem [resolvable:$true] %s12_s7 }
   0x2   :  { %p123_p0 = scmp.ne.s32.totalorder %s199_s0, %s122_s10  ;;  %p126_p1 = scmp.lt.u32.totalorder %s122_s10, %s199_s0 }
   0x4   :  { %p128_p2 = pnand %p126_p1, %p123_p0 }
   0x6   :  { %131 = shalt.err (!%p128_p2)
}
   0x7   :  { %s132_s15 = scalar_lea.vmem %s13_s7, 256  ;;  %p137_p4 = scmp.lt.s32.totalorder %s13_s7, %s13_s7 }
   0x8   :  { %p133_p3 = scmp.ne.s32.totalorder %s13_s7, %s132_s15  ;;  %p138_p5 = scmp.lt.s32.totalorder %s132_s15, %s132_s15 }
   0xa   :  { %p139_p6 = por %p138_p5, %p137_p4 }
   0xc   :  { %p140_p7 = pnand %p139_p6, %p133_p3 }
   0xe   :  { %143 = shalt.err (!%p140_p7)
}
   0xf   :  { %s147_s16 = smov 128   ;;  %s148_s17 = smov 8  }
  0x10   :  { %18 = dma.hbm_to_vmem [thread:$0]  %s199_s0, 256, %s13_s7, [#allocation3], %s147_s16, %s147_s16, %s148_s17  }
  0x11   :  { %144 = dma.done.wait [#allocation3], 256  }
  0x12   :  { %145 = vsyncadd [#allocation3], 4294967040  ;;  %vm30_vm0 = vcmask 1043456   ;;  %v22_v0 = vld [vmem:[#allocation2] sm:$0xff]  ;;  %v23_v1 = vld [vmem:[#allocation2 + $0x8] sm:$0xff]  ;;  %v94_v45 = vlaneseq }
  0x13   :  { %v26_v2 = vcombine.high %v22_v0, %v22_v0  ;;  %v27_v3 = vcombine.high %v23_v1, %v23_v1  ;;  %v31_v4 = vsel %vm30_vm0, %v22_v0, 0.0  ;;  %v32_v5 = vsel %vm30_vm0, %v23_v1, 0.0  ;;  %89 = vst [vmem:[%s200_s1] sm:$0xf] %v22_v0  ;;  %91 = vst [vmem:[%s200_s1 + $0x10] sm:$0xf] %v23_v1 }
  0x14   :  { %v33_v6 = vadd.f32 %v32_v5, %v31_v4  ;;  %vm96_vm5 = vcmp.lt.s32.totalorder %v94_v45, 256 }
  0x15   :  { %v34_v7 = vsel %vm30_vm0, %v26_v2, 0.0  ;;  %v35_v8 = vsel %vm30_vm0, %v27_v3, 0.0  ;;  %90 = vst [vmem:[%s200_s1 + $0x8] sm:$0xf] %v26_v2  ;;  %92 = vst [vmem:[%s200_s1 + $0x18] sm:$0xf] %v27_v3 }
  0x16   :  { %v36_v9 = vadd.f32 %v35_v8, %v34_v7  ;;  %v38_v10 = vmul.f32 0.5, %v33_v6 }
  0x18   :  { %v39_v11 = vmul.f32 0.5, %v36_v9 }
  0x1a   :  { %v42_v12 = vcombine.low %v38_v10, %v39_v11 }
  0x1c   :  { %v44_v13 = vsub.f32 %v22_v0, %v42_v12  ;;  %v45_v14 = vsub.f32 %v23_v1, %v42_v12 }
  0x1e   :  { %v46_v15 = vmul.f32 %v44_v13, %v44_v13  ;;  %v47_v16 = vmul.f32 %v45_v14, %v45_v14 }
  0x20   :  { %v50_v17 = vcombine.high %v46_v15, %v46_v15  ;;  %v51_v18 = vcombine.high %v47_v16, %v47_v16  ;;  %v54_v19 = vsel %vm30_vm0, %v46_v15, 0.0  ;;  %v55_v20 = vsel %vm30_vm0, %v47_v16, 0.0 }
  0x21   :  { %v56_v21 = vadd.f32 %v55_v20, %v54_v19 }
  0x22   :  { %v57_v22 = vsel %vm30_vm0, %v50_v17, 0.0  ;;  %v58_v23 = vsel %vm30_vm0, %v51_v18, 0.0 }
  0x23   :  { %v59_v24 = vadd.f32 %v58_v23, %v57_v22  ;;  %118 = vrsqrt.f32 %v56_v21  ;;  %vm62_vm1 = vcmp.eq.f32.partialorder %v56_v21, inf  ;;  %v65_v26 = vand.u32 2147483648, %v56_v21 }
  0x24   :  { %vm64_vm2 = vcmp.eq.f32.partialorder %v56_v21, 0.0 }
  0x25   :  { %120 = vrsqrt.f32 %v59_v24  ;;  %vm69_vm3 = vcmp.eq.f32.partialorder %v59_v24, inf  ;;  %v72_v29 = vand.u32 2147483648, %v59_v24  ;;  %vm71_vm4 = vcmp.eq.f32.partialorder %v59_v24, 0.0 }
  0x2d   :  { %v119_v25 = vpop.eup %118 }
  0x2e   :  { %v61_v27 = vmul.f32 %v119_v25, %v56_v21 }
  0x2f   :  { %v121_v28 = vpop.eup %120 }
  0x30   :  { %v63_v30 = vsel %vm62_vm1, %v56_v21, %v61_v27  ;;  %v68_v31 = vmul.f32 %v121_v28, %v59_v24 }
  0x31   :  { %v66_v32 = vsel %vm64_vm2, %v65_v26, %v63_v30 }
  0x32   :  { %v70_v33 = vsel %vm69_vm3, %v59_v24, %v68_v31  ;;  %v74_v34 = vsel %vm30_vm0, %v66_v32, 0.0 }
  0x33   :  { %v73_v35 = vsel %vm71_vm4, %v72_v29, %v70_v33 }
  0x34   :  { %v75_v36 = vsel %vm30_vm0, %v73_v35, 0.0 }
  0x35   :  { %v76_v37 = vadd.f32 %v75_v36, %v74_v34 }
  0x37   :  { %77 = vadd.xlane.f32.xlu0 %v76_v37 }
  0xc4   :  { %v78_v38 = vpop.xlane.xlu0 %77 }
  0xc5   :  { %v79_v39 = vrot.slane %v78_v38, 4 }
  0xc7   :  { %v80_v40 = vadd.f32 %v79_v39, %v78_v38 }
  0xc9   :  { %v81_v41 = vrot.slane %v80_v40, 2 }
  0xcb   :  { %v82_v42 = vadd.f32 %v81_v41, %v80_v40 }
  0xcd   :  { %v83_v43 = vrot.slane %v82_v42, 1 }
  0xcf   :  { %v84_v44 = vadd.f32 %v83_v43, %v82_v42 }
  0xd1   :  { %111 = vpush %v84_v44 }
 0x102   :  { %s112_s27 = spop %111 }
 0x103   :  { %s88_s28 = smul.f32 0.0009765625, %s112_s27 }
 0x105   :  { %v93_v46 = vstv %s88_s28 }
 0x106   :  { %109 = vst.msk [vmem:[%s200_s1 + $0x4] ss:$8 sm:$0x3] %vm96_vm5, %v93_v46  ;;  %110 = vst.msk [vmem:[%s200_s1 + $0x14] ss:$8 sm:$0x3] %vm96_vm5, %v93_v46 }
 0x107   :  { %108 = vsyncpa [#allocation3], 1 }

</bundles_post_ra>
